<compile_context>
chip_gen: v6e
topology: v6e:2x2x1
jax: 0.10.0
libtpu: 0.0.40
codegen_flags: <defaults>
</compile_context>

<pallas_src>
import functools
import math

import jax
import jax.numpy as jnp
from jax.experimental import pallas as pl
from jax.experimental.pallas import tpu as pltpu


def _round_up(x, m):
    return (x + m - 1) // m * m


def _cdiv(a, b):
    return (a + b - 1) // b


def _lm_head_kernel(x_ref, wd_ref, bd_ref, g_ref, beta_ref, wo_ref, bo_ref,
                    o_ref, h_ref):
    """grid = (row tiles i [parallel, outer], vocab tiles j [arbitrary, inner])."""

    # Dense -> GELU -> LayerNorm computed once per row tile, reused across
    # every vocab tile via the persistent VMEM scratch h_ref.
    @pl.when(pl.program_id(1) == 0)
    def _():
        x = x_ref[...]
        # dense: x @ W_d^T + b_d  (W_d kept in native (E, E) Linear layout)
        h = jax.lax.dot_general(
            x, wd_ref[...],
            dimension_numbers=(((1,), (1,)), ((), ())),
            preferred_element_type=jnp.float32)
        h = h + bd_ref[...].astype(jnp.float32)

        # exact GELU: 0.5 * x * (1 + erf(x / sqrt(2)))
        h = 0.5 * h * (1.0 + jax.lax.erf(h * (1.0 / math.sqrt(2.0))))

        # LayerNorm over last dim (eps = 1e-5), biased variance, affine
        mu = jnp.mean(h, axis=-1, keepdims=True)
        var = jnp.mean((h - mu) * (h - mu), axis=-1, keepdims=True)
        h = (h - mu) * jax.lax.rsqrt(var + 1e-5)
        h = h * g_ref[...].astype(jnp.float32) + beta_ref[...].astype(jnp.float32)

        # cast back to the compute dtype right before the vocab matmuls
        h_ref[...] = h.astype(h_ref.dtype)

    # output projection for this vocab tile: h @ W_out_tile^T + bias_tile
    y = jax.lax.dot_general(
        h_ref[...], wo_ref[...],
        dimension_numbers=(((1,), (1,)), ((), ())),
        preferred_element_type=jnp.float32)
    o_ref[...] = (y + bo_ref[...].astype(jnp.float32)).astype(o_ref.dtype)


def _vmem_capacity_bytes():
    """Per-core VMEM capacity; conservative (v7x-sized) fallback."""
    cap = None
    try:
        info = pltpu.get_tpu_info()
        cap = getattr(info, "vmem_capacity_bytes", None)
    except Exception:
        cap = None
    if not cap:
        cap = 64 * 1024 * 1024
    return int(cap)


def _tile_vmem_bytes(tm, tv, E, x_b, wd_b, wo_b, o_b):
    """Rough footprint: double-buffered pipelined operands + h scratch."""
    return (2 * tm * E * x_b          # feature-row tile
            + 2 * E * E * wd_b        # dense weight (grid-invariant, 2 bufs)
            + 2 * 3 * E * 4           # dense bias / gamma / beta (upper bound)
            + 2 * tv * E * wo_b       # W_out tile
            + 2 * tv * 4              # out-bias tile
            + 2 * tm * tv * o_b       # logits tile
            + tm * E * x_b)           # h scratch


@functools.partial(jax.jit, static_argnames=("tm", "tv"))
def roberta_lm_head(features, w_dense, b_dense, gamma, beta, w_out, b_out,
                    *, tm=None, tv=None):
    """features: (B, T, E); w_dense: (E, E); w_out: (V, E). Returns (B, T, V).

    tm/tv=None -> tiles auto-sized against the chip's VMEM budget.
    """
    B, T, E = features.shape
    V = w_out.shape[0]
    M = B * T

    x2d = features.reshape(M, E)

    x_b = jnp.dtype(features.dtype).itemsize
    wd_b = jnp.dtype(w_dense.dtype).itemsize
    wo_b = jnp.dtype(w_out.dtype).itemsize
    o_b = x_b

    vmem_cap = _vmem_capacity_bytes()
    vmem_limit = min(int(vmem_cap * 0.75), vmem_cap - (8 << 20))
    vmem_limit = max(vmem_limit, 32 * 1024 * 1024)
    tile_budget = int(vmem_limit * 0.9)

    # ---- row tile: arithmetic-intensity lever (W_out is re-streamed from HBM
    # once per row tile, so the inner loop does ~tm FLOPs per W_out byte).
    tm_req = 1024 if tm is None else tm
    if M <= tm_req:
        tm_eff = M                           # single row tile (full-dim block)
    else:
        tm_eff = _round_up(tm_req, 8)
        # Keep >= 2 row tiles when there is enough work so the "parallel"
        # axis can feed both TensorCores on megacore / v7x.
        if tm is None and M > 512 and _cdiv(M, tm_eff) < 2:
            tm_eff = _round_up(_cdiv(M, 2), 8)

    # ---- vocab tile: big (>=1024 lanes) to amortize per-grid-step overhead
    # and make each W_out DMA multi-MiB.
    tv_req = 2048 if tv is None else tv
    if V <= tv_req:
        tv_eff = V                           # single vocab tile (full-dim block)
    else:
        tv_eff = _round_up(tv_req, 128)

    # ---- shrink auto-chosen tiles until the footprint fits the VMEM budget
    # (re-derived per chip generation: v7x only has 64 MiB/TC).
    if tm is None or tv is None:
        while _tile_vmem_bytes(tm_eff, tv_eff, E, x_b, wd_b, wo_b, o_b) > tile_budget:
            if tv is None and tv_eff > 512 and tv_eff >= tm_eff:
                tv_eff = _round_up(tv_eff // 2, 128)
            elif tm is None and tm_eff > 256:
                tm_eff = _round_up(tm_eff // 2, 8)
            elif tv is None and tv_eff > 512:
                tv_eff = _round_up(tv_eff // 2, 128)
            else:
                break

    grid_rows = _cdiv(M, tm_eff)
    grid_vocab = _cdiv(V, tv_eff)
    grid = (grid_rows, grid_vocab)

    # Broadcast-friendly 2-D views of the 1-D parameters (no data copies).
    bd = b_dense.reshape(1, E)
    g = gamma.reshape(1, E)
    bt = beta.reshape(1, E)
    bo = b_out.reshape(1, V)

    # True HBM footprint: W_out (and its bias) are re-streamed per row tile.
    cost = pl.CostEstimate(
        flops=2 * M * E * E + 2 * M * E * V,
        transcendentals=M * E,
        bytes_accessed=(M * E * x_b
                        + E * E * wd_b
                        + grid_rows * V * E * wo_b
                        + grid_rows * V * jnp.dtype(b_out.dtype).itemsize
                        + M * V * o_b))

    out2d = pl.pallas_call(
        _lm_head_kernel,
        out_shape=jax.ShapeDtypeStruct((M, V), features.dtype),
        grid_spec=pltpu.PrefetchScalarGridSpec(
            num_scalar_prefetch=0,
            grid=grid,
            in_specs=[
                pl.BlockSpec((tm_eff, E), lambda i, j: (i, 0)),   # feature rows
                pl.BlockSpec((E, E),      lambda i, j: (0, 0)),   # dense W (E,E)
                pl.BlockSpec((1, E),      lambda i, j: (0, 0)),   # dense bias
                pl.BlockSpec((1, E),      lambda i, j: (0, 0)),   # LN gamma
                pl.BlockSpec((1, E),      lambda i, j: (0, 0)),   # LN beta
                pl.BlockSpec((tv_eff, E), lambda i, j: (j, 0)),   # W_out tile (V,E)
                pl.BlockSpec((1, tv_eff), lambda i, j: (0, j)),   # out-bias tile
            ],
            out_specs=pl.BlockSpec((tm_eff, tv_eff), lambda i, j: (i, j)),
            scratch_shapes=[pltpu.VMEM((tm_eff, E), features.dtype)],
        ),
        compiler_params=pltpu.CompilerParams(
            dimension_semantics=("parallel", "arbitrary"),
            vmem_limit_bytes=vmem_limit),
        cost_estimate=cost,
    )(x2d, w_dense, bd, g, bt, w_out, bo)

    # No padding was added and boundary blocks are masked on write, so the
    # logits can be reshaped directly (no O(M*V) slice copy).
    return out2d.reshape(B, T, V)


def _reference(features, w_dense, b_dense, gamma, beta, w_out, b_out):
    """Pure-JAX reference matching the PyTorch module."""
    x = features.astype(jnp.float32)
    h = x @ w_dense.astype(jnp.float32).T + b_dense.astype(jnp.float32)
    h = 0.5 * h * (1.0 + jax.lax.erf(h / math.sqrt(2.0)))
    mu = jnp.mean(h, axis=-1, keepdims=True)
    var = jnp.mean((h - mu) ** 2, axis=-1, keepdims=True)
    h = (h - mu) * jax.lax.rsqrt(var + 1e-5)
    h = h * gamma.astype(jnp.float32) + beta.astype(jnp.float32)
    y = h @ w_out.astype(jnp.float32).T + b_out.astype(jnp.float32)
    return y.astype(features.dtype)


def _init_params(key, embed_dim, output_dim, dtype=jnp.float32):
    """Deterministic synthetic parameter init (matches module __init__ shapes)."""
    k1, k2, k3 = jax.random.split(key, 3)
    lim = 1.0 / math.sqrt(embed_dim)
    w_dense = jax.random.uniform(k1, (embed_dim, embed_dim), dtype, -lim, lim)
    b_dense = jax.random.uniform(k2, (embed_dim,), dtype, -lim, lim)
    gamma = jnp.ones((embed_dim,), dtype)
    beta = jnp.zeros((embed_dim,), dtype)
    w_out = jax.random.uniform(k3, (output_dim, embed_dim), dtype, -lim, lim)
    b_out = jnp.zeros((output_dim,), dtype)
    return w_dense, b_dense, gamma, beta, w_out, b_out


if __name__ == "__main__":
    key = jax.random.PRNGKey(0)

    # Small shapes consistent with the module: (batch, seq, embed) -> vocab.
    # Test 1: auto tile selection, single (row, vocab) tile.
    B, T, E, V = 2, 8, 32, 64
    kf, kp, kf2, kp2 = jax.random.split(key, 4)

    features = jax.random.normal(kf, (B, T, E), jnp.float32)
    params = _init_params(kp, E, V)
    logits = roberta_lm_head(features, *params)
    jax.block_until_ready(logits)
    assert logits.shape == (B, T, V)
    ref = _reference(features, *params)
    assert jnp.allclose(logits, ref, rtol=2e-3, atol=2e-3)

    # Test 2: explicit small tiles -> multi-tile grid with partial boundary
    # blocks on BOTH axes (M=10 with tm=8, V=192 with tv=128), exercising the
    # no-pad / no-slice ragged-edge path and the per-row-tile h-scratch reuse.
    B2, T2, E2, V2 = 2, 5, 32, 192
    features2 = jax.random.normal(kf2, (B2, T2, E2), jnp.float32)
    params2 = _init_params(kp2, E2, V2)
    logits2 = roberta_lm_head(features2, *params2, tm=8, tv=128)
    jax.block_until_ready(logits2)
    assert logits2.shape == (B2, T2, V2)
    ref2 = _reference(features2, *params2)
    assert jnp.allclose(logits2, ref2, rtol=2e-3, atol=2e-3)

    print("KERNEL_OK")
</pallas_src>

<mosaic_0001>
module attributes {stable_mosaic.version = 11 : i64} {
  func.func @_lm_head_kernel(%arg0: i32, %arg1: i32, %arg2: memref<16x32xf32, #tpu.memory_space<vmem>>, %arg3: memref<32x32xf32, #tpu.memory_space<vmem>>, %arg4: memref<1x32xf32, #tpu.memory_space<vmem>>, %arg5: memref<1x32xf32, #tpu.memory_space<vmem>>, %arg6: memref<1x32xf32, #tpu.memory_space<vmem>>, %arg7: memref<64x32xf32, #tpu.memory_space<vmem>>, %arg8: memref<1x64xf32, #tpu.memory_space<vmem>>, %arg9: memref<16x64xf32, #tpu.memory_space<vmem>>, %arg10: memref<16x32xf32, #tpu.memory_space<vmem>>) attributes {dimension_semantics = [#tpu.dimension_semantics<parallel>, #tpu.dimension_semantics<arbitrary>], iteration_bounds = array<i64: 1, 1>, scalar_prefetch = 0 : i64, scratch_operands = 1 : i64, tpu.core_type = #tpu.core_type<tc>, window_params = [{transform_indices = @transform_0, window_bounds = array<i64: 16, 32>}, {pipeline_mode = #tpu.pipeline_mode<synchronous>, transform_indices = @transform_1, window_bounds = array<i64: 32, 32>}, {pipeline_mode = #tpu.pipeline_mode<synchronous>, transform_indices = @transform_2, window_bounds = array<i64: 1, 32>}, {pipeline_mode = #tpu.pipeline_mode<synchronous>, transform_indices = @transform_3, window_bounds = array<i64: 1, 32>}, {pipeline_mode = #tpu.pipeline_mode<synchronous>, transform_indices = @transform_4, window_bounds = array<i64: 1, 32>}, {transform_indices = @transform_5, window_bounds = array<i64: 64, 32>}, {transform_indices = @transform_6, window_bounds = array<i64: 1, 64>}, {transform_indices = @transform_7, window_bounds = array<i64: 16, 64>}]} {
    %c0_i32 = arith.constant 0 : i32
    %0 = arith.cmpi eq, %arg1, %c0_i32 : i32
    %1 = arith.extui %0 : i1 to i32
    %c0_i32_0 = arith.constant 0 : i32
    %2 = arith.cmpi ne, %1, %c0_i32_0 : i32
    scf.if %2 {
      %c0_8 = arith.constant 0 : index
      %c0_9 = arith.constant 0 : index
      %10 = vector.load %arg2[%c0_8, %c0_9] : memref<16x32xf32, #tpu.memory_space<vmem>>, vector<16x32xf32>
      %c0_10 = arith.constant 0 : index
      %c0_11 = arith.constant 0 : index
      %11 = vector.load %arg3[%c0_10, %c0_11] : memref<32x32xf32, #tpu.memory_space<vmem>>, vector<32x32xf32>
      %cst_12 = arith.constant dense<0.000000e+00> : vector<16x32xf32>
      %12 = tpu.matmul %10, %11, %cst_12 {dimension_numbers = #tpu.dot_dimension_numbers<[1], [1], [0], [0], [0, 0, 1, 0], [], []>} : vector<16x32xf32>, vector<32x32xf32>, vector<16x32xf32> -> vector<16x32xf32>
      %c0_13 = arith.constant 0 : index
      %c0_14 = arith.constant 0 : index
      %13 = vector.load %arg4[%c0_13, %c0_14] : memref<1x32xf32, #tpu.memory_space<vmem>>, vector<1x32xf32>
      %14 = vector.broadcast %13 : vector<1x32xf32> to vector<16x32xf32>
      %15 = arith.addf %12, %14 : vector<16x32xf32>
      %cst_15 = arith.constant 5.000000e-01 : f32
      %16 = vector.broadcast %cst_15 : f32 to vector<16x32xf32>
      %17 = arith.mulf %16, %15 : vector<16x32xf32>
      %cst_16 = arith.constant 0.707106769 : f32
      %18 = vector.broadcast %cst_16 : f32 to vector<16x32xf32>
      %19 = arith.mulf %15, %18 : vector<16x32xf32>
      %20 = math.erf %19 : vector<16x32xf32>
      %cst_17 = arith.constant 1.000000e+00 : f32
      %21 = vector.broadcast %cst_17 : f32 to vector<16x32xf32>
      %22 = arith.addf %21, %20 : vector<16x32xf32>
      %23 = arith.mulf %17, %22 : vector<16x32xf32>
      %cst_18 = arith.constant dense<0.000000e+00> : vector<16xf32>
      %24 = vector.multi_reduction <add>, %23, %cst_18 [1] : vector<16x32xf32> to vector<16xf32>
      %25 = vector.shape_cast %24 : vector<16xf32> to vector<16x1xf32>
      %cst_19 = arith.constant 3.200000e+01 : f32
      %26 = vector.broadcast %cst_19 : f32 to vector<16x1xf32>
      %27 = arith.divf %25, %26 : vector<16x1xf32>
      %28 = vector.broadcast %27 : vector<16x1xf32> to vector<16x32xf32>
      %29 = arith.subf %23, %28 : vector<16x32xf32>
      %30 = vector.broadcast %27 : vector<16x1xf32> to vector<16x32xf32>
      %31 = arith.subf %23, %30 : vector<16x32xf32>
      %32 = arith.mulf %29, %31 : vector<16x32xf32>
      %cst_20 = arith.constant dense<0.000000e+00> : vector<16xf32>
      %33 = vector.multi_reduction <add>, %32, %cst_20 [1] : vector<16x32xf32> to vector<16xf32>
      %34 = vector.shape_cast %33 : vector<16xf32> to vector<16x1xf32>
      %cst_21 = arith.constant 3.200000e+01 : f32
      %35 = vector.broadcast %cst_21 : f32 to vector<16x1xf32>
      %36 = arith.divf %34, %35 : vector<16x1xf32>
      %37 = vector.broadcast %27 : vector<16x1xf32> to vector<16x32xf32>
      %38 = arith.subf %23, %37 : vector<16x32xf32>
      %cst_22 = arith.constant 9.99999974E-6 : f32
      %39 = vector.broadcast %cst_22 : f32 to vector<16x1xf32>
      %40 = arith.addf %36, %39 : vector<16x1xf32>
      %41 = math.rsqrt %40 : vector<16x1xf32>
      %42 = vector.broadcast %41 : vector<16x1xf32> to vector<16x32xf32>
      %43 = arith.mulf %38, %42 : vector<16x32xf32>
      %c0_23 = arith.constant 0 : index
      %c0_24 = arith.constant 0 : index
      %44 = vector.load %arg5[%c0_23, %c0_24] : memref<1x32xf32, #tpu.memory_space<vmem>>, vector<1x32xf32>
      %45 = vector.broadcast %44 : vector<1x32xf32> to vector<16x32xf32>
      %46 = arith.mulf %43, %45 : vector<16x32xf32>
      %c0_25 = arith.constant 0 : index
      %c0_26 = arith.constant 0 : index
      %47 = vector.load %arg6[%c0_25, %c0_26] : memref<1x32xf32, #tpu.memory_space<vmem>>, vector<1x32xf32>
      %48 = vector.broadcast %47 : vector<1x32xf32> to vector<16x32xf32>
      %49 = arith.addf %46, %48 : vector<16x32xf32>
      %c0_27 = arith.constant 0 : index
      %c0_28 = arith.constant 0 : index
      %50 = vector.load %arg10[%c0_27, %c0_28] : memref<16x32xf32, #tpu.memory_space<vmem>>, vector<16x32xf32>
      tpu.vector_store %arg10[%c0_27, %c0_28], %49 {strides = array<i32>} : memref<16x32xf32, #tpu.memory_space<vmem>>, vector<16x32xf32>,
    } else {
    }
    %c0 = arith.constant 0 : index
    %c0_1 = arith.constant 0 : index
    %3 = vector.load %arg10[%c0, %c0_1] : memref<16x32xf32, #tpu.memory_space<vmem>>, vector<16x32xf32>
    %c0_2 = arith.constant 0 : index
    %c0_3 = arith.constant 0 : index
    %4 = vector.load %arg7[%c0_2, %c0_3] : memref<64x32xf32, #tpu.memory_space<vmem>>, vector<64x32xf32>
    %cst = arith.constant dense<0.000000e+00> : vector<16x64xf32>
    %5 = tpu.matmul %3, %4, %cst {dimension_numbers = #tpu.dot_dimension_numbers<[1], [1], [0], [0], [0, 0, 1, 0], [], []>} : vector<16x32xf32>, vector<64x32xf32>, vector<16x64xf32> -> vector<16x64xf32>
    %c0_4 = arith.constant 0 : index
    %c0_5 = arith.constant 0 : index
    %6 = vector.load %arg8[%c0_4, %c0_5] : memref<1x64xf32, #tpu.memory_space<vmem>>, vector<1x64xf32>
    %7 = vector.broadcast %6 : vector<1x64xf32> to vector<16x64xf32>
    %8 = arith.addf %5, %7 : vector<16x64xf32>
    %c0_6 = arith.constant 0 : index
    %c0_7 = arith.constant 0 : index
    %9 = vector.load %arg9[%c0_6, %c0_7] : memref<16x64xf32, #tpu.memory_space<vmem>>, vector<16x64xf32>
    tpu.vector_store %arg9[%c0_6, %c0_7], %8 {strides = array<i32>} : memref<16x64xf32, #tpu.memory_space<vmem>>, vector<16x64xf32>,
    return
  }
  func.func @transform_0(%arg0: i32, %arg1: i32) -> (i32, i32) {
    %c0_i32 = arith.constant 0 : i32
    %c0_i32_0 = arith.constant 0 : i32
    return %arg0, %c0_i32 : i32, i32
  }
  func.func @transform_1(%arg0: i32, %arg1: i32) -> (i32, i32) {
    %c0_i32 = arith.constant 0 : i32
    %c0_i32_0 = arith.constant 0 : i32
    %c0_i32_1 = arith.constant 0 : i32
    return %c0_i32, %c0_i32_0 : i32, i32
  }
  func.func @transform_2(%arg0: i32, %arg1: i32) -> (i32, i32) {
    %c0_i32 = arith.constant 0 : i32
    %c0_i32_0 = arith.constant 0 : i32
    %c0_i32_1 = arith.constant 0 : i32
    return %c0_i32, %c0_i32_0 : i32, i32
  }
  func.func @transform_3(%arg0: i32, %arg1: i32) -> (i32, i32) {
    %c0_i32 = arith.constant 0 : i32
    %c0_i32_0 = arith.constant 0 : i32
    %c0_i32_1 = arith.constant 0 : i32
    return %c0_i32, %c0_i32_0 : i32, i32
  }
  func.func @transform_4(%arg0: i32, %arg1: i32) -> (i32, i32) {
    %c0_i32 = arith.constant 0 : i32
    %c0_i32_0 = arith.constant 0 : i32
    %c0_i32_1 = arith.constant 0 : i32
    return %c0_i32, %c0_i32_0 : i32, i32
  }
  func.func @transform_5(%arg0: i32, %arg1: i32) -> (i32, i32) {
    %c0_i32 = arith.constant 0 : i32
    %c0_i32_0 = arith.constant 0 : i32
    return %arg1, %c0_i32 : i32, i32
  }
  func.func @transform_6(%arg0: i32, %arg1: i32) -> (i32, i32) {
    %c0_i32 = arith.constant 0 : i32
    %c0_i32_0 = arith.constant 0 : i32
    return %c0_i32, %arg1 : i32, i32
  }
  func.func @transform_7(%arg0: i32, %arg1: i32) -> (i32, i32) {
    %c0_i32 = arith.constant 0 : i32
    return %arg0, %arg1 : i32, i32
  }
}

</mosaic_0001>

<bundles_post_ra>
// kernel: roberta_lm_head.1
= control target key start
LH: loop header
LB: loop body
LE: loop exit
PB: predicated region body
PF: predicated region fallthrough
CT: control target
= control target key end

     0   :  { %vm44_vm0 = vcmask 261120   ;;  %s570_s0 = inlined_call_operand.vmem [shape: f32[16,32], index: 0, kind: input, shape index: {}]   ;;  %s571_s1 = inlined_call_operand.vmem [shape: f32[32,32], index: 1, kind: input, shape index: {}]   ;;  %s572_s2 = inlined_call_operand.vmem [shape: f32[1,32], index: 2, kind: input, shape index: {}]   ;;  %s573_s3 = inlined_call_operand.vmem [shape: f32[1,32], index: 3, kind: input, shape index: {}]   ;;  %s574_s4 = inlined_call_operand.vmem [shape: f32[1,32], index: 4, kind: input, shape index: {}]   ;;  %s575_s5 = inlined_call_operand.vmem [shape: f32[64,32], index: 5, kind: input, shape index: {}]   ;;  %s576_s6 = inlined_call_operand.vmem [shape: f32[1,64], index: 6, kind: input, shape index: {}]   ;;  %s577_s7 = inlined_call_operand.hbm [shape: f32[16,64], index: 7, kind: output, shape index: {}]  }
   0x1   :  { %v36_v0 = vld [vmem:[%s571_s1 + $0x18] sm:$0xff]  ;;  %v35_v1 = vld [vmem:[%s571_s1 + $0x10] sm:$0xff]  ;;  %v31_v2 = vld [vmem:[%s570_s0] sm:$0xff] }
   0x2   :  { %373 = vmatprep.subr.msk.mxu0 %vm44_vm0, %v36_v0  ;;  %381 = vmatprep.mubr.msk.f32.mxu0 %vm44_vm0, %v31_v2 }
   0x3   :  { %374 = vmatpush3.xpose.msk.msra.mxu0 %vm44_vm0, %v36_v0 }
   0x4   :  { %12 = vsyncpa [#allocation4], 0  ;;  %375 = vmatprep.subr.msk.mxu0 %vm44_vm0, %v35_v1  ;;  %v34_v3 = vld [vmem:[%s571_s1 + $0x8] sm:$0xff]  ;;  %v33_v4 = vld [vmem:[%s571_s1] sm:$0xff]  ;;  %vm318_vm1 = vcmask 523264  }
   0x5   :  { %v32_v5 = vld [vmem:[%s570_s0 + $0x8] sm:$0xff]  ;;  %v337_v6 = vld [vmem:[%s572_s2] ss:$0 sm:$0xff]  ;;  %v204_v33 = vld [vmem:[%s575_s5 + $0x38] sm:$0xff] }
   0x6   :  { %384 = vmatprep.subr.msk.mxu1 %vm44_vm0, %v204_v33  ;;  %v203_v34 = vld [vmem:[%s575_s5 + $0x30] sm:$0xff]  ;;  %v202_v35 = vld [vmem:[%s575_s5 + $0x28] sm:$0xff]  ;;  %v201_v36 = vld [vmem:[%s575_s5 + $0x20] sm:$0xff] }
   0x7   :  { %376 = vmatpush3.xpose.msk.msra.mxu0 %vm44_vm0, %v35_v1  ;;  %385 = vmatpush3.xpose.msk.msra.mxu1 %vm44_vm0, %v204_v33  ;;  %v200_v37 = vld [vmem:[%s575_s5 + $0x18] sm:$0xff]  ;;  %v199_v38 = vld [vmem:[%s575_s5 + $0x10] sm:$0xff]  ;;  %v198_v39 = vld [vmem:[%s575_s5 + $0x8] sm:$0xff] }
   0x8   :  { %377 = vmatprep.subr.msk.mxu0 %vm44_vm0, %v34_v3  ;;  %386 = vmatprep.subr.msk.mxu1 %vm44_vm0, %v203_v34  ;;  %v197_v40 = vld [vmem:[%s575_s5] sm:$0xff] }
   0x9   :  { %v344_v48 = vld [vmem:[%s573_s3] ss:$0 sm:$0xff] }
   0xa   :  { %v345_v50 = vld [vmem:[%s574_s4] ss:$0 sm:$0xff]  ;;  %s436_s4 = smov [#allocation3]  }
   0xb   :  { %378 = vmatpush3.xpose.msk.msra.mxu0 %vm44_vm0, %v34_v3  ;;  %387 = vmatpush3.xpose.msk.msra.mxu1 %vm44_vm0, %v203_v34  ;;  %v346_v59 = vld [vmem:[%s576_s6] ss:$0 sm:$0xff]  ;;  %s326_s9 = sshll.u32 %s436_s4, 4  ;;  %s327_s9 = int_to_ptr.vmem [resolvable:$true] %s326_s9 }
   0xc   :  { %379 = vmatprep.subr.msk.mxu0 %vm44_vm0, %v33_v4  ;;  %388 = vmatprep.subr.msk.mxu1 %vm44_vm0, %v202_v35  ;;  %s414_s10 = scalar_lea.vmem %s327_s9, 256  ;;  %p419_p1 = scmp.lt.s32.totalorder %s327_s9, %s327_s9 }
   0xd   :  { %p415_p0 = scmp.ne.s32.totalorder %s327_s9, %s414_s10  ;;  %p420_p2 = scmp.lt.s32.totalorder %s414_s10, %s414_s10 }
   0xf   :  { %380 = vmatpush3.xpose.msk.msra.mxu0 %vm44_vm0, %v33_v4  ;;  %389 = vmatpush3.xpose.msk.msra.mxu1 %vm44_vm0, %v202_v35  ;;  %p421_p3 = por %p420_p2, %p419_p1 }
  0x10   :  { %390 = vmatprep.subr.msk.mxu1 %vm44_vm0, %v201_v36 }
  0x11   :  { %p422_p4 = pnand %p421_p3, %p415_p0 }
  0x12   :  { %382 = vmatmul.mubr.msk.f32.vlgmr.msra.gmra.mxu0 %vm44_vm0, %v32_v5 }
  0x13   :  { %391 = vmatpush3.xpose.msk.msra.mxu1 %vm44_vm0, %v201_v36 }
  0x14   :  { %392 = vmatprep.subr.msk.mxu1 %vm44_vm0, %v200_v37 }
  0x17   :  { %393 = vmatpush3.xpose.msk.msra.mxu1 %vm44_vm0, %v200_v37 }
  0x18   :  { %394 = vmatprep.subr.msk.mxu1 %vm44_vm0, %v199_v38 }
  0x1b   :  { %395 = vmatpush3.xpose.msk.msra.mxu1 %vm44_vm0, %v199_v38 }
  0x1c   :  { %396 = vmatprep.subr.msk.mxu1 %vm44_vm0, %v198_v39 }
  0x1f   :  { %397 = vmatpush3.xpose.msk.msra.mxu1 %vm44_vm0, %v198_v39 }
  0x20   :  { %398 = vmatprep.subr.msk.mxu1 %vm44_vm0, %v197_v40 }
  0x23   :  { %399 = vmatpush3.xpose.msk.msra.mxu1 %vm44_vm0, %v197_v40 }
  0xd2   :  { %v383_v7 = vpop.f32.mrf.mxu0 }
  0xd3   :  { %v135_v8 = vadd.f32 %v383_v7, %v337_v6 }
  0xd4   :  { %v129_v9 = vpop.f32.mrf.mxu0 }
  0xd5   :  { %v141_v10 = vmul.f32 0.70710677, %v135_v8  ;;  %v130_v11 = vadd.f32 %v337_v6, %v129_v9  ;;  %v139_v18 = vmul.f32 0.5, %v135_v8 }
  0xd7   :  { %406 = verf.f32 %v141_v10  ;;  %v140_v12 = vmul.f32 0.70710677, %v130_v11  ;;  %v138_v15 = vmul.f32 0.5, %v130_v11 }
  0xd9   :  { %408 = verf.f32 %v140_v12 }
  0xe4   :  { %v407_v13 = vpop.eup %406 }
  0xe5   :  { %v145_v17 = vadd.f32 1.0, %v407_v13 }
  0xe6   :  { %v409_v14 = vpop.eup %408 }
  0xe7   :  { %v144_v16 = vadd.f32 1.0, %v409_v14  ;;  %v147_v21 = vmul.f32 %v145_v17, %v139_v18 }
  0xe9   :  { %v146_v19 = vmul.f32 %v144_v16, %v138_v15  ;;  %v151_v22 = vsel %vm44_vm0, %v147_v21, 0.0 }
  0xeb   :  { %v148_v20 = vsel %vm44_vm0, %v146_v19, 0.0 }
  0xec   :  { %149 = vadd.xlane.f32.xlu0 %v148_v20 }
  0xf0   :  { %152 = vadd.xlane.f32.xlu0 %v151_v22 }
 0x175   :  { %v150_v23 = vpop.xlane.xlu0 %149 }
 0x176   :  { %v155_v24 = vmul.f32 0.03125, %v150_v23 }
 0x178   :  { %v157_v25 = vsub.f32 %v146_v19, %v155_v24 }
 0x179   :  { %v153_v26 = vpop.xlane.xlu0 %152 }
 0x17a   :  { %v156_v27 = vmul.f32 0.03125, %v153_v26  ;;  %v159_v28 = vmul.f32 %v157_v25, %v157_v25 }
 0x17c   :  { %v158_v29 = vsub.f32 %v147_v21, %v156_v27  ;;  %v161_v30 = vsel %vm44_vm0, %v159_v28, 0.0 }
 0x17d   :  { %162 = vadd.xlane.f32.xlu1 %v161_v30 }
 0x17e   :  { %v160_v31 = vmul.f32 %v158_v29, %v158_v29 }
 0x180   :  { %v164_v32 = vsel %vm44_vm0, %v160_v31, 0.0 }
 0x181   :  { %165 = vadd.xlane.f32.xlu1 %v164_v32 }
 0x206   :  { %v163_v41 = vpop.xlane.xlu1 %162 }
 0x207   :  { %v167_v42 = vmul.f32 0.03125, %v163_v41 }
 0x209   :  { %v169_v43 = vadd.f32 1e-05, %v167_v42 }
 0x20a   :  { %v166_v44 = vpop.xlane.xlu1 %165 }
 0x20b   :  { %410 = vrsqrt.f32 %v169_v43  ;;  %v168_v45 = vmul.f32 0.03125, %v166_v44 }
 0x20d   :  { %v170_v46 = vadd.f32 1e-05, %v168_v45 }
 0x20f   :  { %412 = vrsqrt.f32 %v170_v46 }
 0x218   :  { %v411_v47 = vpop.eup %410 }
 0x219   :  { %v173_v49 = vmul.f32 %v411_v47, %v157_v25 }
 0x21b   :  { %v182_v51 = vmul.f32 %v344_v48, %v173_v49 }
 0x21c   :  { %v413_v52 = vpop.eup %412 }
 0x21d   :  { %v191_v53 = vadd.f32 %v345_v50, %v182_v51  ;;  %v174_v54 = vmul.f32 %v413_v52, %v158_v29 }
 0x21f   :  { %193 = vst.msk [vmem:[#allocation2] sm:$0xff] %vm44_vm0, %v191_v53  ;;  %v183_v55 = vmul.f32 %v344_v48, %v174_v54 }
 0x221   :  { %v192_v56 = vadd.f32 %v345_v50, %v183_v55 }
 0x223   :  { %194 = vst.msk [vmem:[#allocation2 + $0x8] sm:$0xff] %vm44_vm0, %v192_v56 }
 0x226   :  { %v195_v57 = vld [vmem:[#allocation2] sm:$0xff] }
 0x227   :  { %400 = vmatprep.mubr.msk.f32.mxu1 %vm44_vm0, %v195_v57 }
 0x22a   :  { %v196_v58 = vld [vmem:[#allocation2 + $0x8] sm:$0xff] }
 0x22b   :  { %401 = vmatmul.mubr.msk.f32.vlgmr.msra.gmra.mxu1 %vm44_vm0, %v196_v58 }
 0x2eb   :  { %v402_v60 = vpop.f32.mrf.mxu1 }
 0x2ec   :  { %v315_v61 = vadd.f32 %v402_v60, %v346_v59 }
 0x2ed   :  { %v309_v62 = vpop.f32.mrf.mxu1 }
 0x2ee   :  { %320 = vst.msk [vmem:[#allocation3 + $0x8] sm:$0xff] %vm318_vm1, %v315_v61  ;;  %v310_v63 = vadd.f32 %v346_v59, %v309_v62 }
 0x2f0   :  { %319 = vst.msk [vmem:[#allocation3] sm:$0xff] %vm318_vm1, %v310_v63 }
 0x2f1   :  { %425 = shalt.err (!%p422_p4)
}
 0x2f2   :  { %s437_s11 = smov 128   ;;  %s438_s12 = smov 8  }
 0x2f3   :  { %332 = dma.vmem_to_hbm [thread:$0]  %s327_s9, 256, %s577_s7, [#allocation4], %s437_s11, %s437_s11, %s438_s12  }
 0x2f4   :  { %434 = dma.done.wait [#allocation4], 256  }
 0x2f5   :  { %435 = vsyncadd [#allocation4], 4294967040 }
 0x2f6   :  { %336 = vsyncpa [#allocation4], 1 }

</bundles_post_ra>
